<compile_context>
chip_gen: v7x
topology: tpu7x:2x2x1
jax: 0.10.0
libtpu: 0.0.40
codegen_flags: <defaults>
</compile_context>

<pallas_src>
import numpy as np
import jax
import jax.numpy as jnp
from jax import lax
from jax.experimental import pallas as pl
from jax.experimental.pallas import tpu as pltpu

_K1D = (0.05, 0.25, 0.4, 0.25, 0.05)   # matches EdgeLoss.__init__ (separable 5x5)
_EPS = 1e-3                            # CharbonnierLoss eps


def _make_lap_matrices(H, W):
    """Build A_H (H,H) and A_W^T (W,W) in float64 numpy (exact), cast to f32.
    lap(z) = z - A_H @ z @ A_W^T reproduces blur(4*evenmask*blur(z)) with
    replicate boundary handling exactly."""
    def blur_mat(n):
        B = np.zeros((n, n), np.float64)
        for i in range(n):
            for t in range(-2, 3):
                j = min(max(i + t, 0), n - 1)   # replicate ('edge') padding
                B[i, j] += _K1D[t + 2]
        return B

    def a_mat(n):
        B = blur_mat(n)
        d = 2.0 * (np.arange(n) % 2 == 0).astype(np.float64)   # 2*even -> 4 overall
        return (B * d[None, :]) @ B                            # B @ diag(d) @ B

    a_h = a_mat(H).astype(np.float32)
    a_wt = a_mat(W).T.astype(np.float32)
    return jnp.asarray(a_h), jnp.asarray(a_wt)


def _edge_loss_kernel(a_h_ref, a_wt_ref, x_ref, y_ref, out_ref):
    """One grid step = one batch element, all C channels.
    x_ref/y_ref: (C, H, W); a_h_ref: (H, H); a_wt_ref: (W, W); out_ref: (8, 128)."""
    a_h = a_h_ref[...]
    a_wt = a_wt_ref[...]
    eps2 = jnp.float32(_EPS * _EPS)

    C = x_ref.shape[0]
    acc = jnp.zeros((8, 128), jnp.float32)
    for c in range(C):                       # C is small & static -> unrolled
        # lap(x) - lap(y) == lap(x - y): one Laplacian per plane.
        z = x_ref[c].astype(jnp.float32) - y_ref[c].astype(jnp.float32)   # (H, W)
        t = jnp.dot(a_h, z, preferred_element_type=jnp.float32,
                    precision=lax.Precision.HIGHEST)
        t = jnp.dot(t, a_wt, preferred_element_type=jnp.float32,
                    precision=lax.Precision.HIGHEST)
        d = z - t                            # Laplacian of (x - y) for this plane
        acc = acc + jnp.sum(jnp.sqrt(d * d + eps2))   # scalar broadcast over block
    out_ref[...] = acc                       # lane-dense unmasked store


@jax.jit
def edge_loss(x, y):
    N, C, H, W = x.shape
    a_h, a_wt = _make_lap_matrices(H, W)

    # VMEM budget: x,y double-buffered blocks + resident A matrices + f32 temps.
    est = (4 * C * H * W * 4            # 2 inputs x 2 pipeline buffers
           + 2 * (H * H + W * W) * 4    # A_H, A_W^T (+ buffer headroom)
           + 8 * H * W * 4              # per-channel f32 intermediates
           + (1 << 20))
    vmem_limit = int(min(max(est, 32 << 20), 64 << 20))

    partial = pl.pallas_call(
        _edge_loss_kernel,
        out_shape=jax.ShapeDtypeStruct((N, 8, 128), jnp.float32),
        grid=(N,),
        in_specs=[
            pl.BlockSpec((H, H), lambda n: (0, 0)),            # A_H, resident
            pl.BlockSpec((W, W), lambda n: (0, 0)),            # A_W^T, resident
            pl.BlockSpec((None, C, H, W), lambda n: (n, 0, 0, 0)),
            pl.BlockSpec((None, C, H, W), lambda n: (n, 0, 0, 0)),
        ],
        out_specs=pl.BlockSpec((None, 8, 128), lambda n: (n, 0, 0)),
        compiler_params=pltpu.CompilerParams(
            dimension_semantics=("parallel",),    # independent per-n outputs
            vmem_limit_bytes=vmem_limit),
    )(a_h, a_wt, x, y)

    total = jnp.sum(partial[:, 0, 0])
    return total / (N * C * H * W)


def _edge_loss_ref(x, y):
    """Pure-JAX reference mirroring the PyTorch module (for correctness check)."""
    k1 = jnp.array(_K1D, dtype=jnp.float32)
    k2 = jnp.outer(k1, k1)
    C = x.shape[1]
    w = jnp.broadcast_to(k2, (C, 1, 5, 5))

    def conv_gauss(img):
        img = jnp.pad(img, ((0, 0), (0, 0), (2, 2), (2, 2)), mode='edge')
        return lax.conv_general_dilated(
            img, w, (1, 1), 'VALID',
            dimension_numbers=('NCHW', 'OIHW', 'NCHW'),
            feature_group_count=C,
            precision=lax.Precision.HIGHEST)

    def lap(cur):
        filt = conv_gauss(cur)
        mask = jnp.zeros_like(filt).at[:, :, ::2, ::2].set(1.0)
        filt2 = conv_gauss(filt * mask * 4.0)
        return cur - filt2

    d = lap(x) - lap(y)
    return jnp.mean(jnp.sqrt(d * d + _EPS * _EPS))


if __name__ == "__main__":
    key = jax.random.PRNGKey(0)
    kx, ky = jax.random.split(key)
    # EdgeLoss' kernel is built for 3 channels (groups=3), so C must be 3.
    x = jax.random.uniform(kx, (2, 3, 16, 16), dtype=jnp.float32)
    y = jax.random.uniform(ky, (2, 3, 16, 16), dtype=jnp.float32)

    loss = edge_loss(x, y)
    jax.block_until_ready(loss)

    ref = _edge_loss_ref(x, y)
    assert jnp.allclose(loss, ref, atol=2e-5, rtol=2e-4), (float(loss), float(ref))
    print("KERNEL_OK")
</pallas_src>

<mosaic_0001>
module attributes {stable_mosaic.version = 11 : i64} {
  func.func @_edge_loss_kernel(%arg0: i32, %arg1: memref<16x16xf32, #tpu.memory_space<vmem>>, %arg2: memref<16x16xf32, #tpu.memory_space<vmem>>, %arg3: memref<1x3x16x16xf32, #tpu.memory_space<vmem>>, %arg4: memref<1x3x16x16xf32, #tpu.memory_space<vmem>>, %arg5: memref<1x8x128xf32, #tpu.memory_space<vmem>>) attributes {dimension_semantics = [#tpu.dimension_semantics<parallel>], iteration_bounds = array<i64: 2>, scalar_prefetch = 0 : i64, scratch_operands = 0 : i64, tpu.core_type = #tpu.core_type<tc>, window_params = [{pipeline_mode = #tpu.pipeline_mode<synchronous>, transform_indices = @transform_0, window_bounds = array<i64: 16, 16>}, {pipeline_mode = #tpu.pipeline_mode<synchronous>, transform_indices = @transform_1, window_bounds = array<i64: 16, 16>}, {transform_indices = @transform_2, window_bounds = array<i64: 1, 3, 16, 16>}, {transform_indices = @transform_3, window_bounds = array<i64: 1, 3, 16, 16>}, {transform_indices = @transform_4, window_bounds = array<i64: 1, 8, 128>}]} {
    %c0 = arith.constant 0 : index
    %c0_0 = arith.constant 0 : index
    %0 = vector.load %arg1[%c0, %c0_0] : memref<16x16xf32, #tpu.memory_space<vmem>>, vector<16x16xf32>
    %c0_1 = arith.constant 0 : index
    %c0_2 = arith.constant 0 : index
    %1 = vector.load %arg2[%c0_1, %c0_2] : memref<16x16xf32, #tpu.memory_space<vmem>>, vector<16x16xf32>
    %cst = arith.constant 0.000000e+00 : f32
    %2 = vector.broadcast %cst : f32 to vector<8x128xf32>
    %c0_3 = arith.constant 0 : index
    %c0_4 = arith.constant 0 : index
    %c0_5 = arith.constant 0 : index
    %c0_6 = arith.constant 0 : index
    %3 = vector.load %arg3[%c0_3, %c0_4, %c0_5, %c0_6] : memref<1x3x16x16xf32, #tpu.memory_space<vmem>>, vector<1x1x16x16xf32>
    %4 = vector.shape_cast %3 : vector<1x1x16x16xf32> to vector<16x16xf32>
    %c0_7 = arith.constant 0 : index
    %c0_8 = arith.constant 0 : index
    %c0_9 = arith.constant 0 : index
    %c0_10 = arith.constant 0 : index
    %5 = vector.load %arg4[%c0_7, %c0_8, %c0_9, %c0_10] : memref<1x3x16x16xf32, #tpu.memory_space<vmem>>, vector<1x1x16x16xf32>
    %6 = vector.shape_cast %5 : vector<1x1x16x16xf32> to vector<16x16xf32>
    %7 = arith.subf %4, %6 : vector<16x16xf32>
    %cst_11 = arith.constant dense<0.000000e+00> : vector<16x16xf32>
    %8 = tpu.matmul %0, %7, %cst_11 {dimension_numbers = #tpu.dot_dimension_numbers<[1], [0], [0], [1], [0, 0, 1, 1], [], []>, precision = #tpu.contract_precision<fp32>} : vector<16x16xf32>, vector<16x16xf32>, vector<16x16xf32> -> vector<16x16xf32>
    %cst_12 = arith.constant dense<0.000000e+00> : vector<16x16xf32>
    %9 = tpu.matmul %8, %1, %cst_12 {dimension_numbers = #tpu.dot_dimension_numbers<[1], [0], [0], [1], [0, 0, 1, 1], [], []>, precision = #tpu.contract_precision<fp32>} : vector<16x16xf32>, vector<16x16xf32>, vector<16x16xf32> -> vector<16x16xf32>
    %10 = arith.subf %7, %9 : vector<16x16xf32>
    %11 = arith.mulf %10, %10 : vector<16x16xf32>
    %cst_13 = arith.constant 9.99999997E-7 : f32
    %12 = vector.broadcast %cst_13 : f32 to vector<16x16xf32>
    %13 = arith.addf %11, %12 : vector<16x16xf32>
    %14 = math.sqrt %13 : vector<16x16xf32>
    %15 = vector.shape_cast %14 : vector<16x16xf32> to vector<1x16x16xf32>
    %cst_14 = arith.constant dense<0.000000e+00> : vector<1xf32>
    %16 = vector.multi_reduction <add>, %15, %cst_14 [1, 2] : vector<1x16x16xf32> to vector<1xf32>
    %17 = vector.shape_cast %16 : vector<1xf32> to vector<1x1x1xf32>
    %18 = vector.extract %17[0, 0, 0] : f32 from vector<1x1x1xf32>
    %19 = vector.broadcast %18 : f32 to vector<8x128xf32>
    %20 = arith.addf %2, %19 : vector<8x128xf32>
    %c0_15 = arith.constant 0 : index
    %c1 = arith.constant 1 : index
    %c0_16 = arith.constant 0 : index
    %c0_17 = arith.constant 0 : index
    %21 = vector.load %arg3[%c0_15, %c1, %c0_16, %c0_17] : memref<1x3x16x16xf32, #tpu.memory_space<vmem>>, vector<1x1x16x16xf32>
    %22 = vector.shape_cast %21 : vector<1x1x16x16xf32> to vector<16x16xf32>
    %c0_18 = arith.constant 0 : index
    %c1_19 = arith.constant 1 : index
    %c0_20 = arith.constant 0 : index
    %c0_21 = arith.constant 0 : index
    %23 = vector.load %arg4[%c0_18, %c1_19, %c0_20, %c0_21] : memref<1x3x16x16xf32, #tpu.memory_space<vmem>>, vector<1x1x16x16xf32>
    %24 = vector.shape_cast %23 : vector<1x1x16x16xf32> to vector<16x16xf32>
    %25 = arith.subf %22, %24 : vector<16x16xf32>
    %cst_22 = arith.constant dense<0.000000e+00> : vector<16x16xf32>
    %26 = tpu.matmul %0, %25, %cst_22 {dimension_numbers = #tpu.dot_dimension_numbers<[1], [0], [0], [1], [0, 0, 1, 1], [], []>, precision = #tpu.contract_precision<fp32>} : vector<16x16xf32>, vector<16x16xf32>, vector<16x16xf32> -> vector<16x16xf32>
    %cst_23 = arith.constant dense<0.000000e+00> : vector<16x16xf32>
    %27 = tpu.matmul %26, %1, %cst_23 {dimension_numbers = #tpu.dot_dimension_numbers<[1], [0], [0], [1], [0, 0, 1, 1], [], []>, precision = #tpu.contract_precision<fp32>} : vector<16x16xf32>, vector<16x16xf32>, vector<16x16xf32> -> vector<16x16xf32>
    %28 = arith.subf %25, %27 : vector<16x16xf32>
    %29 = arith.mulf %28, %28 : vector<16x16xf32>
    %cst_24 = arith.constant 9.99999997E-7 : f32
    %30 = vector.broadcast %cst_24 : f32 to vector<16x16xf32>
    %31 = arith.addf %29, %30 : vector<16x16xf32>
    %32 = math.sqrt %31 : vector<16x16xf32>
    %33 = vector.shape_cast %32 : vector<16x16xf32> to vector<1x16x16xf32>
    %cst_25 = arith.constant dense<0.000000e+00> : vector<1xf32>
    %34 = vector.multi_reduction <add>, %33, %cst_25 [1, 2] : vector<1x16x16xf32> to vector<1xf32>
    %35 = vector.shape_cast %34 : vector<1xf32> to vector<1x1x1xf32>
    %36 = vector.extract %35[0, 0, 0] : f32 from vector<1x1x1xf32>
    %37 = vector.broadcast %36 : f32 to vector<8x128xf32>
    %38 = arith.addf %20, %37 : vector<8x128xf32>
    %c0_26 = arith.constant 0 : index
    %c2 = arith.constant 2 : index
    %c0_27 = arith.constant 0 : index
    %c0_28 = arith.constant 0 : index
    %39 = vector.load %arg3[%c0_26, %c2, %c0_27, %c0_28] : memref<1x3x16x16xf32, #tpu.memory_space<vmem>>, vector<1x1x16x16xf32>
    %40 = vector.shape_cast %39 : vector<1x1x16x16xf32> to vector<16x16xf32>
    %c0_29 = arith.constant 0 : index
    %c2_30 = arith.constant 2 : index
    %c0_31 = arith.constant 0 : index
    %c0_32 = arith.constant 0 : index
    %41 = vector.load %arg4[%c0_29, %c2_30, %c0_31, %c0_32] : memref<1x3x16x16xf32, #tpu.memory_space<vmem>>, vector<1x1x16x16xf32>
    %42 = vector.shape_cast %41 : vector<1x1x16x16xf32> to vector<16x16xf32>
    %43 = arith.subf %40, %42 : vector<16x16xf32>
    %cst_33 = arith.constant dense<0.000000e+00> : vector<16x16xf32>
    %44 = tpu.matmul %0, %43, %cst_33 {dimension_numbers = #tpu.dot_dimension_numbers<[1], [0], [0], [1], [0, 0, 1, 1], [], []>, precision = #tpu.contract_precision<fp32>} : vector<16x16xf32>, vector<16x16xf32>, vector<16x16xf32> -> vector<16x16xf32>
    %cst_34 = arith.constant dense<0.000000e+00> : vector<16x16xf32>
    %45 = tpu.matmul %44, %1, %cst_34 {dimension_numbers = #tpu.dot_dimension_numbers<[1], [0], [0], [1], [0, 0, 1, 1], [], []>, precision = #tpu.contract_precision<fp32>} : vector<16x16xf32>, vector<16x16xf32>, vector<16x16xf32> -> vector<16x16xf32>
    %46 = arith.subf %43, %45 : vector<16x16xf32>
    %47 = arith.mulf %46, %46 : vector<16x16xf32>
    %cst_35 = arith.constant 9.99999997E-7 : f32
    %48 = vector.broadcast %cst_35 : f32 to vector<16x16xf32>
    %49 = arith.addf %47, %48 : vector<16x16xf32>
    %50 = math.sqrt %49 : vector<16x16xf32>
    %51 = vector.shape_cast %50 : vector<16x16xf32> to vector<1x16x16xf32>
    %cst_36 = arith.constant dense<0.000000e+00> : vector<1xf32>
    %52 = vector.multi_reduction <add>, %51, %cst_36 [1, 2] : vector<1x16x16xf32> to vector<1xf32>
    %53 = vector.shape_cast %52 : vector<1xf32> to vector<1x1x1xf32>
    %54 = vector.extract %53[0, 0, 0] : f32 from vector<1x1x1xf32>
    %55 = vector.broadcast %54 : f32 to vector<8x128xf32>
    %56 = arith.addf %38, %55 : vector<8x128xf32>
    %c0_37 = arith.constant 0 : index
    %c0_38 = arith.constant 0 : index
    %c0_39 = arith.constant 0 : index
    %57 = vector.load %arg5[%c0_37, %c0_38, %c0_39] : memref<1x8x128xf32, #tpu.memory_space<vmem>>, vector<1x8x128xf32>
    %58 = vector.shape_cast %57 : vector<1x8x128xf32> to vector<8x128xf32>
    %59 = vector.shape_cast %56 : vector<8x128xf32> to vector<1x8x128xf32>
    tpu.vector_store %arg5[%c0_37, %c0_38, %c0_39], %59 {strides = array<i32>} : memref<1x8x128xf32, #tpu.memory_space<vmem>>, vector<1x8x128xf32>,
    return
  }
  func.func @transform_0(%arg0: i32) -> (i32, i32) {
    %c0_i32 = arith.constant 0 : i32
    %c0_i32_0 = arith.constant 0 : i32
    %c0_i32_1 = arith.constant 0 : i32
    return %c0_i32, %c0_i32_0 : i32, i32
  }
  func.func @transform_1(%arg0: i32) -> (i32, i32) {
    %c0_i32 = arith.constant 0 : i32
    %c0_i32_0 = arith.constant 0 : i32
    %c0_i32_1 = arith.constant 0 : i32
    return %c0_i32, %c0_i32_0 : i32, i32
  }
  func.func @transform_2(%arg0: i32) -> (i32, i32, i32, i32) {
    %c0_i32 = arith.constant 0 : i32
    %c0_i32_0 = arith.constant 0 : i32
    %c0_i32_1 = arith.constant 0 : i32
    %c0_i32_2 = arith.constant 0 : i32
    return %arg0, %c0_i32, %c0_i32_0, %c0_i32_1 : i32, i32, i32, i32
  }
  func.func @transform_3(%arg0: i32) -> (i32, i32, i32, i32) {
    %c0_i32 = arith.constant 0 : i32
    %c0_i32_0 = arith.constant 0 : i32
    %c0_i32_1 = arith.constant 0 : i32
    %c0_i32_2 = arith.constant 0 : i32
    return %arg0, %c0_i32, %c0_i32_0, %c0_i32_1 : i32, i32, i32, i32
  }
  func.func @transform_4(%arg0: i32) -> (i32, i32, i32) {
    %c0_i32 = arith.constant 0 : i32
    %c0_i32_0 = arith.constant 0 : i32
    %c0_i32_1 = arith.constant 0 : i32
    return %arg0, %c0_i32, %c0_i32_0 : i32, i32, i32
  }
}

</mosaic_0001>

<bundles_post_ra>
// kernel: edge_loss.1
= control target key start
LH: loop header
LB: loop body
LE: loop exit
PB: predicated region body
PF: predicated region fallthrough
CT: control target
= control target key end

     0   :  { %9 = vsyncpa [#allocation3], 0  ;;  %s4856_s0 = inlined_call_operand.hbm [shape: f32[16,16], index: 0, kind: input, shape index: {}]   ;;  %s4857_s1 = inlined_call_operand.hbm [shape: f32[16,16], index: 1, kind: input, shape index: {}]   ;;  %s4858_s2 = inlined_call_operand.hbm [shape: f32[2,3,16,16], index: 2, kind: input, shape index: {}]   ;;  %s4859_s3 = inlined_call_operand.hbm [shape: f32[2,3,16,16], index: 3, kind: input, shape index: {}]   ;;  %s4860_s4 = inlined_call_operand.vmem [shape: f32[2,8,128], index: 4, kind: output, shape index: {}]  }
   0x1   :  { %10 = vsyncpa [#allocation5], 0  ;;  %s4452_s15 = smov 0   ;;  %s4454_s16 = smov 0  }
   0x2   :  { %s4456_s17 = smov 0   ;;  %s4458_s18 = smov 0  }
   0x3 LB: > { %s4471_s19 = sadd.s32 4294967295, %s4419_s18   ;;  %s4474_s20 = sadd.s32 1, %s4419_s18   ;;  %s4419_s18 = sphi %s4458_s18, %s4883_s18   ;;  %s4415_s17 = sphi %s4456_s17, %s4882_s17   ;;  %s4411_s16 = sphi %s4454_s16, %s4881_s16   ;;  %s4407_s15 = sphi %s4452_s15, %s4880_s15  }
   0x4   : > { %s62_s21 = ssub.s32 %s4419_s18, %s4474_s20  ;;  %s65_s22 = sadd.s32 1, %s4415_s17 }
   0x5   : > { %p63_p0 = scmp.eq.s32.totalorder %s62_s21, 0  ;;  %p72_p1 = scmp.ne.s32.totalorder %s4415_s17, %s4411_s16 }
   0x6   : > { %p73_p2 = scmp.eq.s32.totalorder %s4419_s18, 0  ;;  %p78_p3 = scmp.ne.s32.totalorder %s4411_s16, %s4407_s15 }
   0x7   : > { %s4484_s23 = scalar_select %p63_p0, %s4415_s17, %s65_s22  }
   0x8   : > { %p4486_p4 = por %p73_p2, %p72_p1  ;;  %p4861_p5 = scmp.eq.s32.totalorder %s4471_s19, 0 }
   0x9   : > { %p3551_p6 = scmp.ge.s32.totalorder %s4419_s18, 1  ;;  %p141_p7 = scmp.lt.s32.totalorder %s4419_s18, 3 }
   0xa   : > { %p4495_p8 = por %p4861_p5, %p78_p3  ;;  %s4421_s27 = smov [#allocation2]  }
   0xb   : > { %p4499_p9 = pnand %p3551_p6, %p141_p7  ;;  %s153_s28 = sshll.u32 %s4421_s27, 4  ;;  %s154_s28 = int_to_ptr.vmem [resolvable:$true] %s153_s28 }
   0xc   : > { %s4867_s25 = scalar_select %p4495_p8, 1, 0 }
   0xd   : > { %s4868_s26 = scalar_select %p4499_p9, 1, 0 }
   0xe   : > { %p4194_p10 = pneg %p4499_p9  ;;  %p4210_p12 = scmp.lt.s32.totalorder %s4419_s18, 2 }
   0xf   : > { %s180_s30 = sand.u32 1, %s4419_s18   ;;  %s182_s5 = sand.u32 1, %s4415_s17  }
  0x10   : > { %p4507_p11 = pnand %p4194_p10, %p4861_p5  ;;  %p4516_p13 = pnand %p4210_p12, %p4486_p4 }
  0x11   : > { %s4261_s9 = scalar_lea.hbm %s4856_s0, 256 }
  0x12   : > { %s4870_s6 = scalar_select %p4516_p13, 1, 0 }
  0x13   : > { %p4262_p0 = scmp.ne.s32.totalorder %s4856_s0, %s4261_s9  ;;  %p4865_p1 = pneg %p4507_p11 }
  0x14   : > { %p4268_p4 = scmp.lt.u32.totalorder %s4261_s9, %s4856_s0 }
  0x15   : > { %p4264_p2 = pnand %p4865_p1, %p4262_p0 }
  0x17   : > { %p4265_p3 = pneg %p4264_p2 }
  0x19   : > { %p4270_p6 = pnand %p4268_p4, %p4265_p3 }
  0x1b   : > { %4273 = shalt.err (!%p4270_p6)
}
  0x1c   : > { %s4274_s14 = scalar_lea.vmem %s154_s28, 256  ;;  %p4282_p5 = scmp.lt.s32.totalorder %s154_s28, %s154_s28 }
  0x1d   : > { %p4275_p7 = scmp.ne.s32.totalorder %s154_s28, %s4274_s14  ;;  %p4283_p8 = scmp.lt.s32.totalorder %s4274_s14, %s4274_s14 }
  0x1f   : > { %p4277_p10 = pnand %p4275_p7, %p4865_p1  ;;  %p4284_p9 = por %p4283_p8, %p4282_p5 }
  0x21   : > { %p4278_p12 = pneg %p4277_p10 }
  0x23   : > { %p4285_p13 = pnand %p4284_p9, %p4278_p12 }
  0x25   : > { %4288 = shalt.err (!%p4285_p13)
}
  0x26   : > { %s4422_s15 = smov 128   ;;  %s4423_s21 = smov 8  }
  0x27   : > { %4197 = dma.hbm_to_vmem [thread:$0]  (!%p4507_p11), %s4856_s0, 256, %s154_s28, [#allocation3], %s4422_s15, %s4422_s15, %s4423_s21  }
  0x28   : > { %s4545_s27 = smul.u32 48, %s182_s5  ;;  %s4424_s8 = smov [#allocation4]  }
  0x29   : > { %s4172_s7 = smul.u32 768, %s4419_s18  ;;  %s166_s9 = sshll.u32 %s4424_s8, 4  ;;  %s4548_s9 = int_to_ptr.vmem [resolvable:$true] %s166_s9 }
  0x2a   : > { %s184_s13 = scalar_lea.vmem [#allocation6], %s4545_s27  ;;  %s4562_s5 = scalar_lea.sflag [#allocation3], %s180_s30 }
  0x2b   : > { %s4555_s12 = scalar_lea.hbm %s4858_s2, %s4172_s7  ;;  %s191_s28 = sshll.u32 %s184_s13, 4  ;;  %s4558_s28 = int_to_ptr.vmem [resolvable:$true] %s191_s28 }
  0x2c   : > { %s4289_s14 = scalar_lea.hbm %s4555_s12, 768  ;;  %p4871_p8 = scmp.ne.s32.totalorder %s4870_s6, 0 }
  0x2d   : > { %p4290_p5 = scmp.ne.s32.totalorder %s4555_s12, %s4289_s14  ;;  %s4294_s8 = scalar_lea.hbm %s4858_s2, 1536 }
  0x2e   : > { %p4291_p9 = pneg %p4871_p8  ;;  %p4295_p2 = scmp.lt.u32.totalorder %s4555_s12, %s4858_s2 }
  0x2f   : > { %p4296_p3 = scmp.lt.u32.totalorder %s4294_s8, %s4289_s14  ;;  %p4298_p6 = scmp.lt.u32.totalorder %s4289_s14, %s4555_s12 }
  0x30   : > { %p4292_p13 = pnand %p4291_p9, %p4290_p5 }
  0x31   : > { %p4297_p4 = por %p4296_p3, %p4295_p2 }
  0x32   : > { %p4293_p0 = pneg %p4292_p13 }
  0x33   : > { %p4299_p7 = por %p4298_p6, %p4297_p4 }
  0x35   : > { %p4300_p10 = pnand %p4299_p7, %p4293_p0 }
  0x37   : > { %4303 = shalt.err (!%p4300_p10)
}
  0x38   : > { %s4304_s30 = scalar_lea.vmem %s4558_s28, 768  ;;  %s4425_s13 = smov [#allocation6]  }
  0x39   : > { %p4305_p12 = scmp.ne.s32.totalorder %s4558_s28, %s4304_s30  ;;  %s4309_s22 = sshll.u32 %s4425_s13, 4  ;;  %s4310_s22 = int_to_ptr.vmem [resolvable:$false] %s4309_s22 }
  0x3a   : > { %s4311_s24 = scalar_lea.vmem %s4310_s22, 1536  ;;  %p4312_p1 = scmp.lt.s32.totalorder %s4558_s28, %s4310_s22 }
  0x3b   : > { %p4307_p5 = pnand %p4305_p12, %p4291_p9  ;;  %p4313_p2 = scmp.lt.s32.totalorder %s4311_s24, %s4304_s30 }
  0x3d   : > { %p4308_p13 = pneg %p4307_p5  ;;  %p4314_p3 = por %p4313_p2, %p4312_p1 }
  0x3f   : > { %p4315_p4 = pnand %p4314_p3, %p4308_p13 }
  0x41   : > { %4318 = shalt.err (!%p4315_p4)
}
  0x42   : > { %4204 = dma.hbm_to_vmem [thread:$0]  (!%p4871_p8), %s4555_s12, 768, %s4558_s28, %s4562_s5, %s4422_s15, %s4422_s15, %s4423_s21  }
  0x43   : > { %s4319_s10 = scalar_lea.hbm %s4857_s1, 256  ;;  %p4872_p0 = pneg %p4507_p11 }
  0x44   : > { %p4320_p1 = scmp.ne.s32.totalorder %s4857_s1, %s4319_s10  ;;  %p4326_p10 = scmp.lt.u32.totalorder %s4319_s10, %s4857_s1 }
  0x46   : > { %p4322_p6 = pnand %p4320_p1, %p4872_p0 }
  0x48   : > { %p4323_p7 = pneg %p4322_p6 }
  0x4a   : > { %p4328_p12 = pnand %p4326_p10, %p4323_p7 }
  0x4c   : > { %4331 = shalt.err (!%p4328_p12)
}
  0x4d   : > { %s4332_s12 = scalar_lea.vmem %s4548_s9, 256  ;;  %p4873_p13 = pmov %p4872_p0 }
  0x4e   : > { %p4333_p5 = scmp.ne.s32.totalorder %s4548_s9, %s4332_s12  ;;  %p4340_p4 = scmp.lt.s32.totalorder %s4548_s9, %s4548_s9 }
  0x4f   : > { %p4341_p1 = scmp.lt.s32.totalorder %s4332_s12, %s4332_s12 }
  0x50   : > { %p4335_p2 = pnand %p4333_p5, %p4873_p13 }
  0x51   : > { %p4342_p0 = por %p4341_p1, %p4340_p4 }
  0x52   : > { %p4336_p3 = pneg %p4335_p2 }
  0x54   : > { %p4343_p6 = pnand %p4342_p0, %p4336_p3 }
  0x56   : > { %4346 = shalt.err (!%p4343_p6)
}
  0x57   : > { %4200 = dma.hbm_to_vmem [thread:$0]  (!%p4507_p11), %s4857_s1, 256, %s4548_s9, [#allocation5], %s4422_s15, %s4422_s15, %s4423_s21  }
  0x58   : > { %s4626_s10 = scalar_lea.hbm %s4859_s3, %s4172_s7  ;;  %s205_s29 = scalar_lea.vmem [#allocation7], %s4545_s27 }
  0x59   : > { %s212_s11 = sshll.u32 %s205_s29, 4  ;;  %s4347_s13 = scalar_lea.hbm %s4626_s10, 768  ;;  %s4629_s11 = int_to_ptr.vmem [resolvable:$true] %s212_s11 }
  0x5a   : > { %p4348_p7 = scmp.ne.s32.totalorder %s4626_s10, %s4347_s13  ;;  %s4352_s30 = scalar_lea.hbm %s4859_s3, 1536 }
  0x5b   : > { %p4353_p12 = scmp.lt.u32.totalorder %s4626_s10, %s4859_s3  ;;  %p4354_p5 = scmp.lt.u32.totalorder %s4352_s30, %s4347_s13 }
  0x5c   : > { %p4350_p10 = pnand %p4348_p7, %p4291_p9  ;;  %p4356_p2 = scmp.lt.u32.totalorder %s4347_s13, %s4626_s10 }
  0x5d   : > { %p4355_p13 = por %p4354_p5, %p4353_p12 }
  0x5e   : > { %p4351_p11 = pneg %p4350_p10 }
  0x5f   : > { %p4357_p3 = por %p4356_p2, %p4355_p13 }
  0x61   : > { %p4358_p4 = pnand %p4357_p3, %p4351_p11 }
  0x63   : > { %4361 = shalt.err (!%p4358_p4)
}
  0x64   : > { %s4362_s27 = scalar_lea.vmem %s4629_s11, 768  ;;  %s4426_s12 = smov [#allocation7]  }
  0x65   : > { %p4363_p1 = scmp.ne.s32.totalorder %s4629_s11, %s4362_s27  ;;  %s4367_s28 = sshll.u32 %s4426_s12, 4  ;;  %s4368_s28 = int_to_ptr.vmem [resolvable:$false] %s4367_s28 }
  0x66   : > { %s4369_s24 = scalar_lea.vmem %s4368_s28, 1536  ;;  %p4370_p7 = scmp.lt.s32.totalorder %s4629_s11, %s4368_s28 }
  0x67   : > { %p4365_p0 = pnand %p4363_p1, %p4291_p9  ;;  %p4371_p10 = scmp.lt.s32.totalorder %s4369_s24, %s4362_s27 }
  0x69   : > { %p4366_p6 = pneg %p4365_p0  ;;  %p4372_p12 = por %p4371_p10, %p4370_p7 }
  0x6b   : > { %p4373_p5 = pnand %p4372_p12, %p4366_p6 }
  0x6d   : > { %4376 = shalt.err (!%p4373_p5)
}
  0x6e   : > { %4207 = dma.hbm_to_vmem [thread:$0]  (!%p4871_p8), %s4626_s10, 768, %s4629_s11, %s4562_s5, %s4422_s15, %s4422_s15, %s4423_s21  }
  0x6f   : > { %p4874_p9 = scmp.ne.s32.totalorder %s4868_s26, 0 }
  0x70   : > { %p4875_p11 = scmp.eq.s32.totalorder (!%p4874_p9), %s4471_s19, 0 }
  0x71   : > { %224 = sbr.rel (%p4874_p9) target bundleno = 982 (0x3d6), region = 36 }
  0x78   : > { %4394 = dma.done.wait (%p4875_p11), [#allocation3], 256   ;;  %p4876_p13 = pmov %p4875_p11 }
  0x79   : > { %p4877_p2 = pmov %p4875_p11 }
  0x7a   : > { %4396 = vsyncadd (%p4876_p13), [#allocation3], 4294967040 }
  0x7b   : > { %4398 = dma.done.wait (%p4877_p2), [#allocation5], 256   ;;  %p4878_p3 = pmov %p4877_p2 }
  0x7c   : > { %s234_s6 = sand.u32 1, %s4471_s19   ;;  %s236_s15 = sand.u32 1, %s4411_s16  }
  0x7d   : > { %4400 = vsyncadd (%p4878_p3), [#allocation5], 4294967040  ;;  %s4175_s21 = smul.u32 48, %s236_s15  ;;  %s235_s26 = scalar_lea.sflag [#allocation3], %s234_s6 }
  0x7e   : > { %p4879_p8 = scmp.ne.s32.totalorder %s4867_s25, 0 }
  0x7f   : > { %s4670_s5 = scalar_lea.vmem [#allocation6], %s4175_s21 }
  0x80   : > { %4402 = dma.done.wait (%p4879_p8), %s235_s26, 1536  }
  0x81   : > { %4404 = vsyncadd (%p4879_p8), %s235_s26, 4294965760  ;;  %vm290_vm0 = vcmask 130048   ;;  %v284_v0 = vld [vmem:[%s4670_s5] sm:$0xff]  ;;  %v285_v1 = vld [vmem:[%s4670_s5 + $0x8] sm:$0xff]  ;;  %s4678_s14 = scalar_lea.vmem [#allocation7], %s4175_s21  ;;  %p276_p4 = scmp.lt.s32.totalorder %s4471_s19, 1 }
  0x82   : > { %v286_v2 = vld [vmem:[%s4678_s14] sm:$0xff]  ;;  %v287_v3 = vld [vmem:[%s4678_s14 + $0x8] sm:$0xff]  ;;  %v3561_v33 = vld [vmem:[%s4670_s5 + $0x10] sm:$0xff] }
  0x83   : > { %v4682_v4 = vsub.f32 %v284_v0, %v286_v2  ;;  %v280_v5 = vld [vmem:[#allocation2] sm:$0xff]  ;;  %v281_v6 = vld [vmem:[#allocation2 + $0x8] sm:$0xff]  ;;  %v4684_v7 = vsub.f32 %v285_v1, %v287_v3  ;;  %s4885_s19 = smov (!%p276_p4, %s4471_s19), 1 }
  0x84   : > { %v292_v8 = vsel %vm290_vm0, %v280_v5, 0  ;;  %v295_v9 = vsel %vm290_vm0, %v281_v6, 0  ;;  %v3562_v34 = vld [vmem:[%s4670_s5 + $0x18] sm:$0xff]  ;;  %v3563_v35 = vld [vmem:[%s4678_s14 + $0x10] sm:$0xff]  ;;  %v3565_v53 = vld [vmem:[%s4670_s5 + $0x20] sm:$0xff]  ;;  %s3560_s10 = sshll.u32 %s4885_s19, 3 }
  0x85   : > { %v298_v10 = vand.u32 4294901760, %v4682_v4  ;;  %v4689_v11 = vand.u32 4294901760, %v292_v8  ;;  %v4691_v12 = vand.u32 4294901760, %v295_v9  ;;  %v301_v13 = vand.u32 4294901760, %v4684_v7  ;;  %v3564_v36 = vld [vmem:[%s4678_s14 + $0x18] sm:$0xff]  ;;  %v3566_v54 = vld [vmem:[%s4670_s5 + $0x28] sm:$0xff]  ;;  %s279_s18 = scalar_lea.vmem %s4860_s4, %s3560_s10 }
  0x86   : > { %v4725_v38 = vsub.f32 %v3561_v33, %v3563_v35  ;;  %v4727_v39 = vsub.f32 %v3562_v34, %v3564_v36  ;;  %v3567_v55 = vld [vmem:[%s4678_s14 + $0x20] sm:$0xff]  ;;  %v3568_v56 = vld [vmem:[%s4678_s14 + $0x28] sm:$0xff] }
  0x87   : > { %v4695_v14 = vsub.f32 %v292_v8, %v4689_v11  ;;  %v4698_v15 = vsub.f32 %v295_v9, %v4691_v12  ;;  %v386_v16 = vsub.f32 %v4682_v4, %v298_v10  ;;  %v3967_v17 = vpack.c.bf16 %v301_v13, %v298_v10 }
  0x88   : > { %v393_v18 = vsub.f32 %v4684_v7, %v301_v13  ;;  %v1350_v40 = vand.u32 4294901760, %v4725_v38  ;;  %v1353_v41 = vand.u32 4294901760, %v4727_v39  ;;  %v4749_v58 = vsub.f32 %v3565_v53, %v3567_v55 }
  0x89   : > { %v4703_v19 = vand.u32 4294901760, %v4695_v14  ;;  %v4706_v20 = vand.u32 4294901760, %v4698_v15  ;;  %v387_v21 = vand.u32 4294901760, %v386_v16  ;;  %3968 = vmatprep.subr.bf16.mxu0 %v3967_v17  ;;  %v4751_v59 = vsub.f32 %v3566_v54, %v3568_v56 }
  0x8a   : > { %v394_v22 = vand.u32 4294901760, %v393_v18  ;;  %3970 = vmatpush3.bf16.msra.mxu0 %v3967_v17  ;;  %v3975_v32 = vpack.c.bf16 %v393_v18, %v386_v16  ;;  %v1438_v42 = vsub.f32 %v4725_v38, %v1350_v40  ;;  %v1445_v43 = vsub.f32 %v4727_v39, %v1353_v41 }
  0x8b   : > { %v367_v23 = vsub.f32 %v4695_v14, %v4703_v19  ;;  %v377_v24 = vsub.f32 %v4698_v15, %v4706_v20  ;;  %v388_v25 = vsub.f32 %v386_v16, %v387_v21  ;;  %v4015_v46 = vpack.c.bf16 %v1353_v41, %v1350_v40  ;;  %v283_v16 = vld [vmem:[#allocation4 + $0x8] sm:$0xff] }
  0x8c   : > { %v395_v26 = vsub.f32 %v393_v18, %v394_v22  ;;  %v3983_v37 = vpack.c.bf16 %v394_v22, %v387_v21  ;;  %v1439_v44 = vand.u32 4294901760, %v1438_v42  ;;  %v1446_v45 = vand.u32 4294901760, %v1445_v43 }
  0x8d   : > { %v4712_v27 = vand.u32 4294901760, %v367_v23  ;;  %v4714_v28 = vand.u32 4294901760, %v377_v24  ;;  %v389_v29 = vand.u32 4294901760, %v388_v25  ;;  %v4023_v52 = vpack.c.bf16 %v1445_v43, %v1438_v42 }
  0x8e   : > { %v396_v30 = vand.u32 4294901760, %v395_v26  ;;  %v1440_v47 = vsub.f32 %v1438_v42, %v1439_v44  ;;  %v1447_v48 = vsub.f32 %v1445_v43, %v1446_v45  ;;  %v4031_v57 = vpack.c.bf16 %v1446_v45, %v1439_v44 }
  0x8f   : > { %3719 = vmatprep.mubr.f32.mxu0 %v4712_v27  ;;  %v2402_v60 = vand.u32 4294901760, %v4749_v58  ;;  %v2405_v61 = vand.u32 4294901760, %v4751_v59 }
  0x90   : > { %3720 = vmatmul.mubr.f32.vlgmr.msra.gmra.mrb[0].mxu0 %v4714_v28  ;;  %v3971_v31 = vpack.c.bf16 %v396_v30, %v389_v29  ;;  %v1441_v49 = vand.u32 4294901760, %v1440_v47  ;;  %v1448_v50 = vand.u32 4294901760, %v1447_v48 }
  0x91   : > { %3726 = vmatprep.mubr.f32.mxu0 %v4689_v11  ;;  %v2490_v62 = vsub.f32 %v4749_v58, %v2402_v60  ;;  %v2497_v63 = vsub.f32 %v4751_v59, %v2405_v61  ;;  %v4063_v2 = vpack.c.bf16 %v2405_v61, %v2402_v60 }
  0x92   : > { %3972 = vmatprep.subr.bf16.mxu0 %v3971_v31  ;;  %v4019_v51 = vpack.c.bf16 %v1448_v50, %v1441_v49 }
  0x93   : > { %3974 = vmatpush3.bf16.msra.mxu0 %v3971_v31  ;;  %v2491_v0 = vand.u32 4294901760, %v2490_v62  ;;  %v2498_v1 = vand.u32 4294901760, %v2497_v63  ;;  %v4071_v10 = vpack.c.bf16 %v2497_v63, %v2490_v62 }
  0x94   : > { %3976 = vmatprep.subr.bf16.mxu0 %v3975_v32 }
  0x95   : > { %v2492_v3 = vsub.f32 %v2490_v62, %v2491_v0  ;;  %v2499_v5 = vsub.f32 %v2497_v63, %v2498_v1  ;;  %v4079_v13 = vpack.c.bf16 %v2498_v1, %v2491_v0 }
  0x97   : > { %v2493_v6 = vand.u32 4294901760, %v2492_v3  ;;  %v2500_v8 = vand.u32 4294901760, %v2499_v5 }
  0x98   : > { %3727 = vmatmul.mubr.f32.vlgmr.msra.gmra.mrb[0].mxu0 %v4691_v12 }
  0x99   : > { %3978 = vmatpush3.bf16.msra.mxu0 %v3975_v32  ;;  %3733 = vmatprep.mubr.f32.mxu0 %v4695_v14  ;;  %v4067_v9 = vpack.c.bf16 %v2500_v8, %v2493_v6 }
  0x9a   : > { %3980 = vmatprep.subr.bf16.mxu0 %v3967_v17 }
  0xa0   : > { %3734 = vmatmul.mubr.f32.vlgmr.msra.gmra.mrb[0].mxu0 %v4698_v15 }
  0xa1   : > { %3982 = vmatpush3.bf16.msra.mxu0 %v3967_v17  ;;  %3740 = vmatprep.mubr.f32.mxu0 %v4703_v19 }
  0xa2   : > { %3984 = vmatprep.subr.bf16.mxu0 %v3983_v37 }
  0xa8   : > { %3741 = vmatmul.mubr.f32.vlgmr.msra.gmra.mrb[0].mxu0 %v4706_v20 }
  0xa9   : > { %3986 = vmatpush3.bf16.msra.mxu0 %v3983_v37  ;;  %3747 = vmatprep.mubr.f32.mxu0 %v4689_v11 }
  0xaa   : > { %3988 = vmatprep.subr.bf16.mxu0 %v3967_v17 }
  0xb0   : > { %3748 = vmatmul.mubr.f32.vlgmr.msra.gmra.mrb[0].mxu0 %v4691_v12 }
  0xb1   : > { %3990 = vmatpush3.bf16.msra.mxu0 %v3967_v17  ;;  %3754 = vmatprep.mubr.f32.mxu0 %v4689_v11  ;;  %v809_v17 = vand.u32 4294901760, %v283_v16 }
  0xb2   : > { %4016 = vmatprep.subr.bf16.mxu0 %v4015_v46 }
  0xb3   : > { %v901_v21 = vsub.f32 %v283_v16, %v809_v17 }
  0xb5   : > { %v902_v22 = vand.u32 4294901760, %v901_v21 }
  0xb7   : > { %v903_v24 = vsub.f32 %v901_v21, %v902_v22 }
  0xb8   : > { %3755 = vmatmul.mubr.f32.vlgmr.msra.gmra.mrb[0].mxu0 %v4691_v12 }
  0xb9   : > { %4018 = vmatpush3.bf16.msra.mxu0 %v4015_v46  ;;  %3803 = vmatprep.mubr.f32.mxu0 %v4712_v27 }
  0xba   : > { %4020 = vmatprep.subr.bf16.mxu0 %v4019_v51 }
  0xbc   : > { %3804 = vmatmul.mubr.f32.vlgmr.msra.gmra.mrb[2].mxu0 %v4714_v28 }
  0xbd   : > { %4022 = vmatpush3.bf16.msra.mxu0 %v4019_v51  ;;  %3810 = vmatprep.mubr.f32.mxu0 %v4689_v11 }
  0xbe   : > { %4024 = vmatprep.subr.bf16.mxu0 %v4023_v52 }
  0xc4   : > { %3811 = vmatmul.mubr.f32.vlgmr.msra.gmra.mrb[2].mxu0 %v4691_v12 }
  0xc5   : > { %4026 = vmatpush3.bf16.msra.mxu0 %v4023_v52  ;;  %3817 = vmatprep.mubr.f32.mxu0 %v4695_v14 }
  0xc6   : > { %4028 = vmatprep.subr.bf16.mxu0 %v4015_v46 }
  0xcc   : > { %3818 = vmatmul.mubr.f32.vlgmr.msra.gmra.mrb[2].mxu0 %v4698_v15 }
  0xcd   : > { %4030 = vmatpush3.bf16.msra.mxu0 %v4015_v46  ;;  %3824 = vmatprep.mubr.f32.mxu0 %v4703_v19 }
  0xce   : > { %4032 = vmatprep.subr.bf16.mxu0 %v4031_v57 }
  0xd4   : > { %3825 = vmatmul.mubr.f32.vlgmr.msra.gmra.mrb[2].mxu0 %v4706_v20 }
  0xd5   : > { %4034 = vmatpush3.bf16.msra.mxu0 %v4031_v57  ;;  %3831 = vmatprep.mubr.f32.mxu0 %v4689_v11 }
  0xd6   : > { %4036 = vmatprep.subr.bf16.mxu0 %v4015_v46 }
  0xdc   : > { %3832 = vmatmul.mubr.f32.vlgmr.msra.gmra.mrb[2].mxu0 %v4691_v12 }
  0xdd   : > { %4038 = vmatpush3.bf16.msra.mxu0 %v4015_v46  ;;  %3838 = vmatprep.mubr.f32.mxu0 %v4689_v11 }
  0xde   : > { %4064 = vmatprep.subr.bf16.mxu0 %v4063_v2 }
  0xe4   : > { %3839 = vmatmul.mubr.f32.vlgmr.msra.gmra.mrb[2].mxu0 %v4691_v12 }
  0xe5   : > { %4066 = vmatpush3.bf16.msra.mxu0 %v4063_v2  ;;  %3887 = vmatprep.mubr.f32.mxu0 %v4712_v27 }
  0xe6   : > { %4068 = vmatprep.subr.bf16.mxu0 %v4067_v9 }
  0xe8   : > { %3888 = vmatmul.mubr.f32.vlgmr.msra.gmra.mrb[4].mxu0 %v4714_v28 }
  0xe9   : > { %4070 = vmatpush3.bf16.msra.mxu0 %v4067_v9  ;;  %3894 = vmatprep.mubr.f32.mxu0 %v4689_v11 }
  0xea   : > { %4072 = vmatprep.subr.bf16.mxu0 %v4071_v10 }
  0xf0   : > { %3895 = vmatmul.mubr.f32.vlgmr.msra.gmra.mrb[4].mxu0 %v4691_v12 }
  0xf1   : > { %4074 = vmatpush3.bf16.msra.mxu0 %v4071_v10  ;;  %3901 = vmatprep.mubr.f32.mxu0 %v4695_v14  ;;  %v282_v14 = vld [vmem:[#allocation4] sm:$0xff] }
  0xf2   : > { %4076 = vmatprep.subr.bf16.mxu0 %v4063_v2 }
  0xf8   : > { %3902 = vmatmul.mubr.f32.vlgmr.msra.gmra.mrb[4].mxu0 %v4698_v15  ;;  %v806_v15 = vand.u32 4294901760, %v282_v14 }
  0xf9   : > { %4078 = vmatpush3.bf16.msra.mxu0 %v4063_v2  ;;  %3908 = vmatprep.mubr.f32.mxu0 %v4703_v19 }
  0xfa   : > { %4080 = vmatprep.subr.bf16.mxu0 %v4079_v13  ;;  %v4776_v18 = vpack.c.bf16 %v809_v17, %v806_v15  ;;  %v894_v19 = vsub.f32 %v282_v14, %v806_v15 }
  0xfc   : > { %3992 = vmatprep.subr.bf16.mxu1 %v4776_v18 }
  0xfd   : > { %3994 = vmatpush3.bf16.msra.mxu1 %v4776_v18 }
 0x100   : > { %3909 = vmatmul.mubr.f32.vlgmr.msra.gmra.mrb[4].mxu0 %v4706_v20  ;;  %v895_v20 = vand.u32 4294901760, %v894_v19 }
 0x101   : > { %4082 = vmatpush3.bf16.msra.mxu0 %v4079_v13  ;;  %3915 = vmatprep.mubr.f32.mxu0 %v4689_v11 }
 0x102   : > { %4084 = vmatprep.subr.bf16.mxu0 %v4063_v2  ;;  %v896_v23 = vsub.f32 %v894_v19, %v895_v20  ;;  %v4785_v27 = vpack.c.bf16 %v902_v22, %v895_v20 }
 0x104   : > { %v897_v25 = vand.u32 4294901760, %v896_v23 }
 0x108   : > { %3916 = vmatmul.mubr.f32.vlgmr.msra.gmra.mrb[4].mxu0 %v4691_v12 }
 0x109   : > { %4086 = vmatpush3.bf16.msra.mxu0 %v4063_v2  ;;  %3922 = vmatprep.mubr.f32.mxu0 %v4689_v11  ;;  %v904_v11 = vand.u32 4294901760, %v903_v24 }
 0x10b   : > { %v4780_v26 = vpack.c.bf16 %v904_v11, %v897_v25 }
 0x10d   : > { %3996 = vmatprep.subr.bf16.mxu1 %v4780_v26 }
 0x110   : > { %3923 = vmatmul.mubr.f32.vlgmr.msra.gmra.mrb[4].mxu0 %v4691_v12  ;;  %v4783_v12 = vpack.c.bf16 %v901_v21, %v894_v19 }
 0x18b   : > { %v3756_v28 = vpop.f32.mrb[0].mxu0 }
 0x18c   : > { %v803_v29 = vsel %vm290_vm0, %v3756_v28, 0  ;;  %v789_v30 = vpop.f32.mrb[1].mxu0 }
 0x18d   : > { %v882_v31 = vand.u32 4294901760, %v803_v29  ;;  %v800_v32 = vsel %vm290_vm0, %v789_v30, 0 }
 0x18e   : > { %v872_v33 = vand.u32 4294901760, %v800_v32 }
 0x18f   : > { %v883_v34 = vsub.f32 %v803_v29, %v882_v31 }
 0x190   : > { %v873_v35 = vsub.f32 %v800_v32, %v872_v33 }
 0x191   : > { %v884_v36 = vand.u32 4294901760, %v883_v34 }
 0x192   : > { %v874_v37 = vand.u32 4294901760, %v873_v35 }
 0x193   : > { %v885_v40 = vsub.f32 %v883_v34, %v884_v36 }
 0x194   : > { %v875_v41 = vsub.f32 %v873_v35, %v874_v37 }
 0x195   : > { %v886_v43 = vand.u32 4294901760, %v885_v40 }
 0x196   : > { %v876_v42 = vand.u32 4294901760, %v875_v41 }
 0x198   : > { %3761 = vmatprep.mubr.f32.mxu1 %v876_v42 }
 0x199   : > { %3762 = vmatmul.mubr.f32.vlgmr.msra.gmra.mrb[0].mxu1 %v886_v43 }
 0x19a   : > { %3768 = vmatprep.mubr.f32.mxu1 %v872_v33  ;;  %3998 = vmatpush3.bf16.msra.mxu1 %v4780_v26 }
 0x19b   : > { %4000 = vmatprep.subr.bf16.mxu1 %v4783_v12 }
 0x1a1   : > { %3769 = vmatmul.mubr.f32.vlgmr.msra.gmra.mrb[0].mxu1 %v882_v31 }
 0x1a2   : > { %3775 = vmatprep.mubr.f32.mxu1 %v873_v35  ;;  %4002 = vmatpush3.bf16.msra.mxu1 %v4783_v12 }
 0x1a3   : > { %4004 = vmatprep.subr.bf16.mxu1 %v4776_v18 }
 0x1a9   : > { %3776 = vmatmul.mubr.f32.vlgmr.msra.gmra.mrb[0].mxu1 %v883_v34 }
 0x1aa   : > { %3782 = vmatprep.mubr.f32.mxu1 %v874_v37  ;;  %4006 = vmatpush3.bf16.msra.mxu1 %v4776_v18 }
 0x1ab   : > { %4008 = vmatprep.subr.bf16.mxu1 %v4785_v27 }
 0x1b1   : > { %3783 = vmatmul.mubr.f32.vlgmr.msra.gmra.mrb[0].mxu1 %v884_v36 }
 0x1b2   : > { %3789 = vmatprep.mubr.f32.mxu1 %v872_v33  ;;  %4010 = vmatpush3.bf16.msra.mxu1 %v4785_v27 }
 0x1b3   : > { %4012 = vmatprep.subr.bf16.mxu1 %v4776_v18 }
 0x1b7   : > { %v3840_v44 = vpop.f32.mrb[2].mxu0 }
 0x1b8   : > { %v1855_v45 = vsel %vm290_vm0, %v3840_v44, 0  ;;  %v1841_v46 = vpop.f32.mrb[3].mxu0 }
 0x1b9   : > { %v1934_v47 = vand.u32 4294901760, %v1855_v45  ;;  %v1852_v48 = vsel %vm290_vm0, %v1841_v46, 0  ;;  %3790 = vmatmul.mubr.f32.vlgmr.msra.gmra.mrb[0].mxu1 %v882_v31 }
 0x1ba   : > { %v1924_v49 = vand.u32 4294901760, %v1852_v48  ;;  %3796 = vmatprep.mubr.f32.mxu1 %v872_v33  ;;  %4014 = vmatpush3.bf16.msra.mxu1 %v4776_v18 }
 0x1bb   : > { %v1935_v50 = vsub.f32 %v1855_v45, %v1934_v47  ;;  %4040 = vmatprep.subr.bf16.mxu1 %v4776_v18 }
 0x1bc   : > { %v1925_v51 = vsub.f32 %v1852_v48, %v1924_v49 }
 0x1bd   : > { %v1936_v52 = vand.u32 4294901760, %v1935_v50 }
 0x1be   : > { %v1926_v53 = vand.u32 4294901760, %v1925_v51 }
 0x1bf   : > { %v1937_v54 = vsub.f32 %v1935_v50, %v1936_v52 }
 0x1c0   : > { %v1927_v55 = vsub.f32 %v1925_v51, %v1926_v53 }
 0x1c1   : > { %3797 = vmatmul.mubr.f32.vlgmr.msra.gmra.mrb[0].mxu1 %v882_v31  ;;  %v1938_v57 = vand.u32 4294901760, %v1937_v54 }
 0x1c2   : > { %4042 = vmatpush3.bf16.msra.mxu1 %v4776_v18  ;;  %v1928_v56 = vand.u32 4294901760, %v1927_v55 }
 0x1c3   : > { %4044 = vmatprep.subr.bf16.mxu1 %v4780_v26 }
 0x1c4   : > { %3845 = vmatprep.mubr.f32.mxu1 %v1928_v56 }
 0x1c5   : > { %3846 = vmatmul.mubr.f32.vlgmr.msra.gmra.mrb[2].mxu1 %v1938_v57 }
 0x1c6   : > { %3852 = vmatprep.mubr.f32.mxu1 %v1924_v49  ;;  %4046 = vmatpush3.bf16.msra.mxu1 %v4780_v26 }
 0x1c7   : > { %4048 = vmatprep.subr.bf16.mxu1 %v4783_v12 }
 0x1cd   : > { %3853 = vmatmul.mubr.f32.vlgmr.msra.gmra.mrb[2].mxu1 %v1934_v47 }
 0x1ce   : > { %3859 = vmatprep.mubr.f32.mxu1 %v1925_v51  ;;  %4050 = vmatpush3.bf16.msra.mxu1 %v4783_v12 }
 0x1cf   : > { %4052 = vmatprep.subr.bf16.mxu1 %v4776_v18 }
 0x1d5   : > { %3860 = vmatmul.mubr.f32.vlgmr.msra.gmra.mrb[2].mxu1 %v1935_v50 }
 0x1d6   : > { %3866 = vmatprep.mubr.f32.mxu1 %v1926_v53  ;;  %4054 = vmatpush3.bf16.msra.mxu1 %v4776_v18 }
 0x1d7   : > { %4056 = vmatprep.subr.bf16.mxu1 %v4785_v27 }
 0x1dd   : > { %3867 = vmatmul.mubr.f32.vlgmr.msra.gmra.mrb[2].mxu1 %v1936_v52 }
 0x1de   : > { %3873 = vmatprep.mubr.f32.mxu1 %v1924_v49  ;;  %4058 = vmatpush3.bf16.msra.mxu1 %v4785_v27 }
 0x1df   : > { %4060 = vmatprep.subr.bf16.mxu1 %v4776_v18 }
 0x1e3   : > { %v3924_v60 = vpop.f32.mrb[4].mxu0 }
 0x1e4   : > { %v2907_v61 = vsel %vm290_vm0, %v3924_v60, 0  ;;  %v2893_v62 = vpop.f32.mrb[5].mxu0 }
 0x1e5   : > { %v2986_v63 = vand.u32 4294901760, %v2907_v61  ;;  %v2904_v0 = vsel %vm290_vm0, %v2893_v62, 0  ;;  %3874 = vmatmul.mubr.f32.vlgmr.msra.gmra.mrb[2].mxu1 %v1934_v47 }
 0x1e6   : > { %v2976_v1 = vand.u32 4294901760, %v2904_v0  ;;  %3880 = vmatprep.mubr.f32.mxu1 %v1924_v49  ;;  %4062 = vmatpush3.bf16.msra.mxu1 %v4776_v18 }
 0x1e7   : > { %v2987_v2 = vsub.f32 %v2907_v61, %v2986_v63  ;;  %4088 = vmatprep.subr.bf16.mxu1 %v4776_v18 }
 0x1e8   : > { %v2977_v3 = vsub.f32 %v2904_v0, %v2976_v1 }
 0x1e9   : > { %v2988_v5 = vand.u32 4294901760, %v2987_v2 }
 0x1ea   : > { %v2978_v6 = vand.u32 4294901760, %v2977_v3 }
 0x1eb   : > { %v2989_v8 = vsub.f32 %v2987_v2, %v2988_v5 }
 0x1ec   : > { %v2979_v9 = vsub.f32 %v2977_v3, %v2978_v6 }
 0x1ed   : > { %3881 = vmatmul.mubr.f32.vlgmr.msra.gmra.mrb[2].mxu1 %v1934_v47  ;;  %v2990_v13 = vand.u32 4294901760, %v2989_v8 }
 0x1ee   : > { %4090 = vmatpush3.bf16.msra.mxu1 %v4776_v18  ;;  %v2980_v10 = vand.u32 4294901760, %v2979_v9 }
 0x1ef   : > { %4092 = vmatprep.subr.bf16.mxu1 %v4780_v26 }
 0x1f0   : > { %3929 = vmatprep.mubr.f32.mxu1 %v2980_v10 }
 0x1f1   : > { %3930 = vmatmul.mubr.f32.vlgmr.msra.gmra.mrb[4].mxu1 %v2990_v13 }
 0x1f2   : > { %3936 = vmatprep.mubr.f32.mxu1 %v2976_v1  ;;  %4094 = vmatpush3.bf16.msra.mxu1 %v4780_v26 }
 0x1f3   : > { %4096 = vmatprep.subr.bf16.mxu1 %v4783_v12 }
 0x1f9   : > { %3937 = vmatmul.mubr.f32.vlgmr.msra.gmra.mrb[4].mxu1 %v2986_v63 }
 0x1fa   : > { %3943 = vmatprep.mubr.f32.mxu1 %v2977_v3  ;;  %4098 = vmatpush3.bf16.msra.mxu1 %v4783_v12 }
 0x1fb   : > { %4100 = vmatprep.subr.bf16.mxu1 %v4776_v18 }
 0x201   : > { %3944 = vmatmul.mubr.f32.vlgmr.msra.gmra.mrb[4].mxu1 %v2987_v2 }
 0x202   : > { %3950 = vmatprep.mubr.f32.mxu1 %v2978_v6  ;;  %4102 = vmatpush3.bf16.msra.mxu1 %v4776_v18 }
 0x203   : > { %4104 = vmatprep.subr.bf16.mxu1 %v4785_v27 }
 0x209   : > { %3951 = vmatmul.mubr.f32.vlgmr.msra.gmra.mrb[4].mxu1 %v2988_v5 }
 0x20a   : > { %3957 = vmatprep.mubr.f32.mxu1 %v2976_v1  ;;  %4106 = vmatpush3.bf16.msra.mxu1 %v4785_v27 }
 0x20b   : > { %4108 = vmatprep.subr.bf16.mxu1 %v4776_v18 }
 0x211   : > { %3958 = vmatmul.mubr.f32.vlgmr.msra.gmra.mrb[4].mxu1 %v2986_v63 }
 0x212   : > { %3964 = vmatprep.mubr.f32.mxu1 %v2976_v1  ;;  %4110 = vmatpush3.bf16.msra.mxu1 %v4776_v18 }
 0x219   : > { %3965 = vmatmul.mubr.f32.vlgmr.msra.gmra.mrb[4].mxu1 %v2986_v63 }
 0x294   : > { %v3798_v14 = vpop.f32.mrb[0].mxu1 }
 0x295   : > { %v1308_v16 = vsub.f32 %v4684_v7, %v3798_v14  ;;  %v1297_v15 = vpop.f32.mrb[1].mxu1 }
 0x296   : > { %v1307_v17 = vsub.f32 %v4682_v4, %v1297_v15 }
 0x297   : > { %v1310_v19 = vmul.f32 %v1308_v16, %v1308_v16 }
 0x298   : > { %v1309_v21 = vmul.f32 %v1307_v17, %v1307_v17 }
 0x299   : > { %v1312_v20 = vadd.f32 1e-06, %v1310_v19 }
 0x29a   : > { %v1311_v22 = vadd.f32 1e-06, %v1309_v21 }
 0x29b   : > { %4249 = vrsqrt.f32 %v1312_v20  ;;  %vm1322_vm1 = vcmp.eq.f32.partialorder %v1312_v20, inf  ;;  %v1325_v26 = vand.u32 2147483648, %v1312_v20  ;;  %vm1324_vm3 = vcmp.eq.f32.partialorder %v1312_v20, 0.0 }
 0x29c   : > { %4251 = vrsqrt.f32 %v1311_v22  ;;  %vm1315_vm2 = vcmp.eq.f32.partialorder %v1311_v22, inf  ;;  %v1318_v18 = vand.u32 2147483648, %v1311_v22  ;;  %vm1317_vm4 = vcmp.eq.f32.partialorder %v1311_v22, 0.0 }
 0x2a5   : > { %v4250_v23 = vpop.eup %4249 }
 0x2a6   : > { %v4252_v24 = vpop.eup %4251  ;;  %v1321_v25 = vmul.f32 %v4250_v23, %v1312_v20 }
 0x2a7   : > { %v1314_v11 = vmul.f32 %v4252_v24, %v1311_v22 }
 0x2a8   : > { %v1323_v12 = vsel %vm1322_vm1, %v1312_v20, %v1321_v25 }
 0x2a9   : > { %v1316_v7 = vsel %vm1315_vm2, %v1311_v22, %v1314_v11  ;;  %v1326_v27 = vsel %vm1324_vm3, %v1325_v26, %v1323_v12 }
 0x2aa   : > { %v1319_v4 = vsel %vm1317_vm4, %v1318_v18, %v1316_v7  ;;  %v1328_v28 = vsel %vm290_vm0, %v1326_v27, 0.0 }
 0x2ab   : > { %v1327_v29 = vsel %vm290_vm0, %v1319_v4, 0.0 }
 0x2ac   : > { %v1329_v30 = vadd.f32 %v1328_v28, %v1327_v29 }
 0x2ae   : > { %1330 = vadd.xlane.f32.xlu0 %v1329_v30 }
 0x2c0   : > { %v3882_v31 = vpop.f32.mrb[2].mxu1 }
 0x2c1   : > { %v2360_v32 = vsub.f32 %v4727_v39, %v3882_v31  ;;  %v2349_v33 = vpop.f32.mrb[3].mxu1 }
 0x2c2   : > { %v2359_v34 = vsub.f32 %v4725_v38, %v2349_v33 }
 0x2c3   : > { %v2362_v35 = vmul.f32 %v2360_v32, %v2360_v32 }
 0x2c4   : > { %v2361_v36 = vmul.f32 %v2359_v34, %v2359_v34 }
 0x2c5   : > { %v2364_v37 = vadd.f32 1e-06, %v2362_v35 }
 0x2c6   : > { %v2363_v40 = vadd.f32 1e-06, %v2361_v36 }
 0x2c7   : > { %4253 = vrsqrt.f32 %v2364_v37  ;;  %vm2374_vm5 = vcmp.eq.f32.partialorder %v2364_v37, inf  ;;  %v2377_v45 = vand.u32 2147483648, %v2364_v37  ;;  %vm2376_vm7 = vcmp.eq.f32.partialorder %v2364_v37, 0.0 }
 0x2c8   : > { %4255 = vrsqrt.f32 %v2363_v40  ;;  %vm2367_vm6 = vcmp.eq.f32.partialorder %v2363_v40, inf  ;;  %v2370_v46 = vand.u32 2147483648, %v2363_v40  ;;  %vm2369_vm8 = vcmp.eq.f32.partialorder %v2363_v40, 0.0 }
 0x2d1   : > { %v4254_v41 = vpop.eup %4253 }
 0x2d2   : > { %v4256_v42 = vpop.eup %4255  ;;  %v2373_v43 = vmul.f32 %v4254_v41, %v2364_v37 }
 0x2d3   : > { %v2366_v44 = vmul.f32 %v4256_v42, %v2363_v40 }
 0x2d4   : > { %v2375_v47 = vsel %vm2374_vm5, %v2364_v37, %v2373_v43 }
 0x2d5   : > { %v2368_v39 = vsel %vm2367_vm6, %v2363_v40, %v2366_v44  ;;  %v2378_v48 = vsel %vm2376_vm7, %v2377_v45, %v2375_v47 }
 0x2d6   : > { %v2371_v38 = vsel %vm2369_vm8, %v2370_v46, %v2368_v39  ;;  %v2380_v49 = vsel %vm290_vm0, %v2378_v48, 0.0 }
 0x2d7   : > { %v2379_v50 = vsel %vm290_vm0, %v2371_v38, 0.0 }
 0x2d8   : > { %v2381_v51 = vadd.f32 %v2380_v49, %v2379_v50 }
 0x2da   : > { %2382 = vadd.xlane.f32.xlu0 %v2381_v51 }
 0x2ec   : > { %v3966_v52 = vpop.f32.mrb[4].mxu1 }
 0x2ed   : > { %v3412_v53 = vsub.f32 %v4751_v59, %v3966_v52  ;;  %v3401_v54 = vpop.f32.mrb[5].mxu1 }
 0x2ee   : > { %v3411_v55 = vsub.f32 %v4749_v58, %v3401_v54 }
 0x2ef   : > { %v3414_v56 = vmul.f32 %v3412_v53, %v3412_v53 }
 0x2f0   : > { %v3413_v57 = vmul.f32 %v3411_v55, %v3411_v55 }
 0x2f1   : > { %v3416_v60 = vadd.f32 1e-06, %v3414_v56 }
 0x2f2   : > { %v3415_v61 = vadd.f32 1e-06, %v3413_v57 }
 0x2f3   : > { %4257 = vrsqrt.f32 %v3416_v60  ;;  %vm3426_vm9 = vcmp.eq.f32.partialorder %v3416_v60, inf  ;;  %v3429_v2 = vand.u32 2147483648, %v3416_v60  ;;  %vm3428_vm11 = vcmp.eq.f32.partialorder %v3416_v60, 0.0 }
 0x2f4   : > { %4259 = vrsqrt.f32 %v3415_v61  ;;  %vm3419_vm10 = vcmp.eq.f32.partialorder %v3415_v61, inf  ;;  %v3422_v3 = vand.u32 2147483648, %v3415_v61  ;;  %vm3421_vm12 = vcmp.eq.f32.partialorder %v3415_v61, 0.0 }
 0x2fd   : > { %v4258_v62 = vpop.eup %4257 }
 0x2fe   : > { %v4260_v63 = vpop.eup %4259  ;;  %v3425_v0 = vmul.f32 %v4258_v62, %v3416_v60 }
 0x2ff   : > { %v3418_v1 = vmul.f32 %v4260_v63, %v3415_v61 }
 0x300   : > { %v3427_v5 = vsel %vm3426_vm9, %v3416_v60, %v3425_v0 }
 0x301   : > { %v3420_v59 = vsel %vm3419_vm10, %v3415_v61, %v3418_v1  ;;  %v3430_v6 = vsel %vm3428_vm11, %v3429_v2, %v3427_v5 }
 0x302   : > { %v3423_v58 = vsel %vm3421_vm12, %v3422_v3, %v3420_v59  ;;  %v3432_v8 = vsel %vm290_vm0, %v3430_v6, 0.0 }
 0x303   : > { %v3431_v9 = vsel %vm290_vm0, %v3423_v58, 0.0 }
 0x304   : > { %v3433_v10 = vadd.f32 %v3432_v8, %v3431_v9 }
 0x306   : > { %3434 = vadd.xlane.f32.xlu1 %v3433_v10 }
 0x33b   : > { %v1331_v13 = vpop.xlane.xlu0 %1330 }
 0x33c   : > { %v1332_v14 = vrot.slane %v1331_v13, 4 }
 0x33e   : > { %v1333_v16 = vadd.f32 %v1332_v14, %v1331_v13 }
 0x340   : > { %v1334_v15 = vrot.slane %v1333_v16, 2 }
 0x342   : > { %v1335_v17 = vadd.f32 %v1334_v15, %v1333_v16 }
 0x344   : > { %v1336_v19 = vrot.slane %v1335_v17, 1 }
 0x346   : > { %v1337_v21 = vadd.f32 %v1336_v19, %v1335_v17 }
 0x348   : > { %4176 = vpush %v1337_v21 }
 0x367   : > { %v2383_v20 = vpop.xlane.xlu0 %2382 }
 0x368   : > { %v2384_v22 = vrot.slane %v2383_v20, 4 }
 0x36a   : > { %v2385_v23 = vadd.f32 %v2384_v22, %v2383_v20 }
 0x36c   : > { %v2386_v24 = vrot.slane %v2385_v23, 2 }
 0x36e   : > { %v2387_v25 = vadd.f32 %v2386_v24, %v2385_v23 }
 0x370   : > { %v2388_v11 = vrot.slane %v2387_v25, 1 }
 0x372   : > { %v2389_v26 = vadd.f32 %v2388_v11, %v2387_v25 }
 0x374   : > { %4178 = vpush %v2389_v26 }
 0x379   : > { %s4177_s25 = spop %4176 }
 0x37a   : > { %v1339_v31 = vstv %s4177_s25 }
 0x393   : > { %v3435_v18 = vpop.xlane.xlu1 %3434 }
 0x394   : > { %v3436_v12 = vrot.slane %v3435_v18, 4 }
 0x396   : > { %v3437_v7 = vadd.f32 %v3436_v12, %v3435_v18 }
 0x398   : > { %v3438_v27 = vrot.slane %v3437_v7, 2 }
 0x39a   : > { %v3439_v4 = vadd.f32 %v3438_v27, %v3437_v7 }
 0x39c   : > { %v3440_v28 = vrot.slane %v3439_v4, 1 }
 0x39e   : > { %v3441_v29 = vadd.f32 %v3440_v28, %v3439_v4 }
 0x3a0   : > { %4180 = vpush %v3441_v29 }
 0x3a5   : > { %s4179_s8 = spop %4178 }
 0x3a6   : > { %v2391_v30 = vstv %s4179_s8 }
 0x3a7   : > { %v2392_v32 = vadd.f32 %v2391_v30, %v1339_v31 }
 0x3d1   : > { %s4181_s29 = spop %4180 }
 0x3d2   : > { %v3443_v33 = vstv %s4181_s29 }
 0x3d3   : > { %v3444_v34 = vadd.f32 %v3443_v33, %v2392_v32 }
 0x3d5   : > { %3445 = vst [vmem:[%s279_s18] sm:$0xff] %v3444_v34 }
 0x3d6 PF: > { %p13_p1 = scmp.ge.s32.totalorder %s4474_s20, 4   ;;  %s4880_s15 = smov %s4411_s16 }
 0x3d7   : > { %s4881_s16 = smov %s4415_s17  ;;  %s4882_s17 = smov %s4484_s23 }
 0x3d8   : > { %s4883_s18 = smov %s4474_s20  ;;  %15 = sbr.rel (!%p13_p1) target bundleno = 3 (0x3), region = 98 }
 0x3df   :  { %3465 = vsyncpa [#allocation3], 1 }
 0x3e0   :  { %3467 = vsyncpa [#allocation3 + $0x1], 1 }
 0x3e1   :  { %3468 = vsyncpa [#allocation5], 1 }

</bundles_post_ra>
